<compile_context>
chip_gen: v5e
topology: v5e:2x2
jax: 0.10.0
libtpu: 0.0.40
codegen_flags: <defaults>
</compile_context>

<pallas_src>
import jax
import jax.numpy as jnp
from jax.experimental import pallas as pl
from jax.experimental.pallas import tpu as pltpu


def augment_shallow_kernel(x_ref, wa_ref, ba_ref, wb_ref, bb_ref,
                           wc_ref, bc_ref, o_ref):
    """One tile of points: psi = affine3(ReLU(affine2(ReLU(affine1(x)))))."""
    mm = lambda a, b: jnp.dot(a, b, preferred_element_type=jnp.float32)

    # fused trans1 -> conv1 (both linear before the first ReLU)
    h = jnp.maximum(mm(x_ref[...], wa_ref[...]) + ba_ref[...], 0.0)      # [TP, H] f32
    # conv2 + ReLU
    h = jnp.maximum(mm(h.astype(wb_ref.dtype), wb_ref[...]) + bb_ref[...], 0.0)
    # trans2 folded per point (affine commutes with the neighbour mean).
    # C_out=8 -> masked 8/128-lane store; one per point, negligible volume.
    o_ref[...] = (mm(h.astype(wc_ref.dtype), wc_ref[...])
                  + bc_ref[...]).astype(o_ref.dtype)


def knn_indices(x, k):
    """Plain-JAX glue: squared-distance KNN via the Gram-matrix identity +
    lax.top_k. x: [B, N, C] -> knn_idx [B, N, k]."""
    # TODO(synk): data-dependent argsort/top_k has no clean Pallas TPU
    # equivalent; this prologue stays in plain JAX (matches get_knn_idx up to
    # tie-breaking among equal distances).
    sq = jnp.sum(x * x, axis=-1)                                         # [B, N]
    gram = jnp.einsum('bic,bjc->bij', x, x)                              # [B, N, N]
    d = sq[:, :, None] + sq[:, None, :] - 2.0 * gram                     # ||xi-xj||^2
    _, knn_idx = jax.lax.top_k(-d, k)                                    # [B, N, k]
    return knn_idx


def knn_group(feats, knn_idx):
    """feats: [B, N, C], knn_idx: [B, N, k] -> [B, N, k, C]."""
    # TODO(synk): data-dependent row gather stays in plain JAX (XLA gather).
    B, N, C = feats.shape
    k = knn_idx.shape[-1]
    flat = knn_idx.reshape(B, N * k)
    g = jnp.take_along_axis(feats, flat[..., None], axis=1)              # [B, N*k, C]
    return g.reshape(B, N, k, C)


def _round_up(a, b):
    return ((a + b - 1) // b) * b


def augment_shallow_forward(x, params, k=12, tile_p=1024,
                            compute_dtype=jnp.bfloat16):
    """x: [B, N, C_in] float32 -> [B, N, C_out] float32."""
    B, N, C = x.shape
    w1t, b1, wc1t, bc1, wc2t, bc2, w2t, b2 = params
    H = w1t.shape[1]
    C_out = w2t.shape[1]

    # ---- KNN prologue (plain JAX, independent of the kernel) ----------------
    knn_idx = knn_indices(x, k)                                          # [B, N, k]

    # ---- host-side weight fusion (f32) ---------------------------------------
    # trans1 and conv1 are both linear before the first ReLU -> one affine map.
    wa = w1t @ wc1t                                                      # [C, H]
    ba = b1 @ wc1t + bc1                                                 # [1, H]
    wb, bb = wc2t, bc2                                                   # [H, H], [1, H]
    wc, bc = w2t, b2                                                     # [H, C_out], [1, C_out]

    # ---- per-point MLP via Pallas --------------------------------------------
    P = B * N
    x2d = x.reshape(P, C)

    # Pad the contraction (channel) dim to 16 so f32 (8-sublane) and packed
    # bf16 (16-sublane) rhs layouts are both tile-aligned.  Zero rows in the
    # weight make the padding a no-op numerically.
    C_pad = _round_up(C, 16)
    if C_pad != C:
        x2d = jnp.pad(x2d, ((0, 0), (0, C_pad - C)))
        wa = jnp.pad(wa, ((0, C_pad - C), (0, 0)))

    tile = min(tile_p, _round_up(P, 8))
    P_pad = _round_up(P, tile)
    if P_pad != P:
        # Zero-padded rows produce bias-derived garbage but are sliced off below.
        x2d = jnp.pad(x2d, ((0, P_pad - P), (0, 0)))

    # bf16 MXU operands (f32 accumulation in-kernel); biases stay f32.
    x2d = x2d.astype(compute_dtype)
    wa_c = wa.astype(compute_dtype)
    wb_c = wb.astype(compute_dtype)
    wc_c = wc.astype(compute_dtype)

    full = lambda a: pl.BlockSpec(a.shape, lambda i: (0,) * a.ndim)

    psi = pl.pallas_call(
        augment_shallow_kernel,
        out_shape=jax.ShapeDtypeStruct((P_pad, C_out), jnp.float32),
        grid=(P_pad // tile,),
        in_specs=[
            pl.BlockSpec((tile, C_pad), lambda i: (i, 0)),
            full(wa_c), full(ba),
            full(wb_c), full(bb),
            full(wc_c), full(bc),
        ],
        out_specs=pl.BlockSpec((tile, C_out), lambda i: (i, 0)),
        compiler_params=pltpu.CompilerParams(
            dimension_semantics=("parallel",)),
    )(x2d, wa_c, ba, wb_c, bb, wc_c, bc)

    # ---- neighbour gather + mean (plain JAX, on the small C_out features) ----
    psi = psi[:P].reshape(B, N, C_out)
    g = knn_group(psi, knn_idx)                                          # [B, N, k, C_out]
    return g.mean(axis=2)                                                # [B, N, C_out]


def reference_forward(x, params, k=12):
    """Pure-JAX f32 reference mirroring the literal PyTorch forward order
    (gather -> trans1 -> conv1+ReLU -> conv2+ReLU -> mean -> trans2)."""
    w1t, b1, wc1t, bc1, wc2t, bc2, w2t, b2 = params
    knn_idx = knn_indices(x, k)
    g = knn_group(x, knn_idx)                                            # [B, N, k, C]
    h = g @ w1t + b1                                                     # trans1
    h = jnp.maximum(h @ wc1t + bc1, 0.0)                                 # conv1 (1x1) + ReLU
    h = jnp.maximum(h @ wc2t + bc2, 0.0)                                 # conv2 (1x1) + ReLU
    h = h.mean(axis=2)                                                   # mean over k
    return h @ w2t + b2                                                  # trans2


def init_params(key, in_channel, hidden_channel, out_channel):
    """Deterministic synthetic parameters (PyTorch-default-style uniform init)."""
    ks = jax.random.split(key, 8)

    def lin(kw, kb, fan_in, fan_out):
        bound = 1.0 / jnp.sqrt(fan_in)
        w = jax.random.uniform(kw, (fan_out, fan_in), jnp.float32, -bound, bound)
        b = jax.random.uniform(kb, (fan_out,), jnp.float32, -bound, bound)
        return w.T, b.reshape(1, fan_out)   # pre-transposed to [in, out], bias [1, out]

    w1t, b1 = lin(ks[0], ks[1], in_channel, hidden_channel)        # trans1
    wc1t, bc1 = lin(ks[2], ks[3], hidden_channel, hidden_channel)  # convs[0] (1x1)
    wc2t, bc2 = lin(ks[4], ks[5], hidden_channel, hidden_channel)  # convs[1] (1x1)
    w2t, b2 = lin(ks[6], ks[7], hidden_channel, out_channel)       # trans2
    return (w1t, b1, wc1t, bc1, wc2t, bc2, w2t, b2)


if __name__ == "__main__":
    B, N, C_IN = 2, 64, 4
    HIDDEN, C_OUT, K = 32, 8, 12

    key = jax.random.PRNGKey(0)
    kx, kp = jax.random.split(key)
    x = jax.random.normal(kx, (B, N, C_IN), jnp.float32)
    params = init_params(kp, C_IN, HIDDEN, C_OUT)

    ref = reference_forward(x, params, k=K)

    # f32 path: tight structural check of the fused / per-point formulation.
    out_f32 = jax.block_until_ready(
        augment_shallow_forward(x, params, k=K, compute_dtype=jnp.float32))
    assert out_f32.shape == (B, N, C_OUT), out_f32.shape
    assert jnp.allclose(out_f32, ref, atol=2e-3, rtol=2e-3), \
        float(jnp.max(jnp.abs(out_f32 - ref)))

    # bf16 path (performance default): tolerance sized for bf16 MXU operands
    # with f32 accumulation.
    out_bf16 = jax.block_until_ready(augment_shallow_forward(x, params, k=K))
    assert out_bf16.shape == (B, N, C_OUT), out_bf16.shape
    assert jnp.allclose(out_bf16, ref, atol=1e-1, rtol=5e-2), \
        float(jnp.max(jnp.abs(out_bf16 - ref)))

    print("KERNEL_OK")
</pallas_src>

<mosaic_0001>
module attributes {stable_mosaic.version = 11 : i64} {
  func.func @augment_shallow_kernel(%arg0: i32, %arg1: memref<128x16xf32, #tpu.memory_space<vmem>>, %arg2: memref<16x32xf32, #tpu.memory_space<vmem>>, %arg3: memref<1x32xf32, #tpu.memory_space<vmem>>, %arg4: memref<32x32xf32, #tpu.memory_space<vmem>>, %arg5: memref<1x32xf32, #tpu.memory_space<vmem>>, %arg6: memref<32x8xf32, #tpu.memory_space<vmem>>, %arg7: memref<1x8xf32, #tpu.memory_space<vmem>>, %arg8: memref<128x8xf32, #tpu.memory_space<vmem>>) attributes {dimension_semantics = [#tpu.dimension_semantics<parallel>], iteration_bounds = array<i64: 1>, scalar_prefetch = 0 : i64, scratch_operands = 0 : i64, tpu.core_type = #tpu.core_type<tc>, window_params = [{transform_indices = @transform_0, window_bounds = array<i64: 128, 16>}, {pipeline_mode = #tpu.pipeline_mode<synchronous>, transform_indices = @transform_1, window_bounds = array<i64: 16, 32>}, {pipeline_mode = #tpu.pipeline_mode<synchronous>, transform_indices = @transform_2, window_bounds = array<i64: 1, 32>}, {pipeline_mode = #tpu.pipeline_mode<synchronous>, transform_indices = @transform_3, window_bounds = array<i64: 32, 32>}, {pipeline_mode = #tpu.pipeline_mode<synchronous>, transform_indices = @transform_4, window_bounds = array<i64: 1, 32>}, {pipeline_mode = #tpu.pipeline_mode<synchronous>, transform_indices = @transform_5, window_bounds = array<i64: 32, 8>}, {pipeline_mode = #tpu.pipeline_mode<synchronous>, transform_indices = @transform_6, window_bounds = array<i64: 1, 8>}, {transform_indices = @transform_7, window_bounds = array<i64: 128, 8>}]} {
    %c0 = arith.constant 0 : index
    %c0_0 = arith.constant 0 : index
    %0 = vector.load %arg1[%c0, %c0_0] : memref<128x16xf32, #tpu.memory_space<vmem>>, vector<128x16xf32>
    %c0_1 = arith.constant 0 : index
    %c0_2 = arith.constant 0 : index
    %1 = vector.load %arg2[%c0_1, %c0_2] : memref<16x32xf32, #tpu.memory_space<vmem>>, vector<16x32xf32>
    %cst = arith.constant dense<0.000000e+00> : vector<128x32xf32>
    %2 = tpu.matmul %0, %1, %cst {dimension_numbers = #tpu.dot_dimension_numbers<[1], [0], [0], [1], [0, 0, 1, 1], [], []>} : vector<128x16xf32>, vector<16x32xf32>, vector<128x32xf32> -> vector<128x32xf32>
    %c0_3 = arith.constant 0 : index
    %c0_4 = arith.constant 0 : index
    %3 = vector.load %arg3[%c0_3, %c0_4] : memref<1x32xf32, #tpu.memory_space<vmem>>, vector<1x32xf32>
    %4 = vector.broadcast %3 : vector<1x32xf32> to vector<128x32xf32>
    %5 = arith.addf %2, %4 : vector<128x32xf32>
    %cst_5 = arith.constant 0.000000e+00 : f32
    %6 = vector.broadcast %cst_5 : f32 to vector<128x32xf32>
    %7 = arith.maximumf %5, %6 : vector<128x32xf32>
    %c0_6 = arith.constant 0 : index
    %c0_7 = arith.constant 0 : index
    %8 = vector.load %arg4[%c0_6, %c0_7] : memref<32x32xf32, #tpu.memory_space<vmem>>, vector<32x32xf32>
    %cst_8 = arith.constant dense<0.000000e+00> : vector<128x32xf32>
    %9 = tpu.matmul %7, %8, %cst_8 {dimension_numbers = #tpu.dot_dimension_numbers<[1], [0], [0], [1], [0, 0, 1, 1], [], []>} : vector<128x32xf32>, vector<32x32xf32>, vector<128x32xf32> -> vector<128x32xf32>
    %c0_9 = arith.constant 0 : index
    %c0_10 = arith.constant 0 : index
    %10 = vector.load %arg5[%c0_9, %c0_10] : memref<1x32xf32, #tpu.memory_space<vmem>>, vector<1x32xf32>
    %11 = vector.broadcast %10 : vector<1x32xf32> to vector<128x32xf32>
    %12 = arith.addf %9, %11 : vector<128x32xf32>
    %cst_11 = arith.constant 0.000000e+00 : f32
    %13 = vector.broadcast %cst_11 : f32 to vector<128x32xf32>
    %14 = arith.maximumf %12, %13 : vector<128x32xf32>
    %c0_12 = arith.constant 0 : index
    %c0_13 = arith.constant 0 : index
    %15 = vector.load %arg6[%c0_12, %c0_13] : memref<32x8xf32, #tpu.memory_space<vmem>>, vector<32x8xf32>
    %cst_14 = arith.constant dense<0.000000e+00> : vector<128x8xf32>
    %16 = tpu.matmul %14, %15, %cst_14 {dimension_numbers = #tpu.dot_dimension_numbers<[1], [0], [0], [1], [0, 0, 1, 1], [], []>} : vector<128x32xf32>, vector<32x8xf32>, vector<128x8xf32> -> vector<128x8xf32>
    %c0_15 = arith.constant 0 : index
    %c0_16 = arith.constant 0 : index
    %17 = vector.load %arg7[%c0_15, %c0_16] : memref<1x8xf32, #tpu.memory_space<vmem>>, vector<1x8xf32>
    %18 = vector.broadcast %17 : vector<1x8xf32> to vector<128x8xf32>
    %19 = arith.addf %16, %18 : vector<128x8xf32>
    %c0_17 = arith.constant 0 : index
    %c0_18 = arith.constant 0 : index
    %20 = vector.load %arg8[%c0_17, %c0_18] : memref<128x8xf32, #tpu.memory_space<vmem>>, vector<128x8xf32>
    tpu.vector_store %arg8[%c0_17, %c0_18], %19 {strides = array<i32>} : memref<128x8xf32, #tpu.memory_space<vmem>>, vector<128x8xf32>,
    return
  }
  func.func @transform_0(%arg0: i32) -> (i32, i32) {
    %c0_i32 = arith.constant 0 : i32
    %c0_i32_0 = arith.constant 0 : i32
    return %arg0, %c0_i32 : i32, i32
  }
  func.func @transform_1(%arg0: i32) -> (i32, i32) {
    %c0_i32 = arith.constant 0 : i32
    %c0_i32_0 = arith.constant 0 : i32
    %c0_i32_1 = arith.constant 0 : i32
    return %c0_i32, %c0_i32_0 : i32, i32
  }
  func.func @transform_2(%arg0: i32) -> (i32, i32) {
    %c0_i32 = arith.constant 0 : i32
    %c0_i32_0 = arith.constant 0 : i32
    %c0_i32_1 = arith.constant 0 : i32
    return %c0_i32, %c0_i32_0 : i32, i32
  }
  func.func @transform_3(%arg0: i32) -> (i32, i32) {
    %c0_i32 = arith.constant 0 : i32
    %c0_i32_0 = arith.constant 0 : i32
    %c0_i32_1 = arith.constant 0 : i32
    return %c0_i32, %c0_i32_0 : i32, i32
  }
  func.func @transform_4(%arg0: i32) -> (i32, i32) {
    %c0_i32 = arith.constant 0 : i32
    %c0_i32_0 = arith.constant 0 : i32
    %c0_i32_1 = arith.constant 0 : i32
    return %c0_i32, %c0_i32_0 : i32, i32
  }
  func.func @transform_5(%arg0: i32) -> (i32, i32) {
    %c0_i32 = arith.constant 0 : i32
    %c0_i32_0 = arith.constant 0 : i32
    %c0_i32_1 = arith.constant 0 : i32
    return %c0_i32, %c0_i32_0 : i32, i32
  }
  func.func @transform_6(%arg0: i32) -> (i32, i32) {
    %c0_i32 = arith.constant 0 : i32
    %c0_i32_0 = arith.constant 0 : i32
    %c0_i32_1 = arith.constant 0 : i32
    return %c0_i32, %c0_i32_0 : i32, i32
  }
  func.func @transform_7(%arg0: i32) -> (i32, i32) {
    %c0_i32 = arith.constant 0 : i32
    %c0_i32_0 = arith.constant 0 : i32
    return %arg0, %c0_i32 : i32, i32
  }
}

</mosaic_0001>

<bundles_post_ra>
// kernel: tpu_custom_call.1
= control target key start
LH: loop header
LB: loop body
LE: loop exit
PB: predicated region body
PF: predicated region fallthrough
CT: control target
= control target key end

     0   :  { %vm48_vm0 = vcmask 130048   ;;  %vm186_vm1 = vcmask 261120   ;;  %vm437_vm2 = vcmask 64512   ;;  %s794_s1 = inlined_call_operand.vmem [shape: f32[16,32], index: 1, kind: input, shape index: {}]   ;;  %s795_s0 = inlined_call_operand.vmem [shape: f32[128,16], index: 0, kind: input, shape index: {}]   ;;  %s796_s2 = inlined_call_operand.vmem [shape: f32[1,32], index: 2, kind: input, shape index: {}]   ;;  %s797_s3 = inlined_call_operand.vmem [shape: f32[32,32], index: 3, kind: input, shape index: {}]   ;;  %s798_s4 = inlined_call_operand.vmem [shape: f32[1,32], index: 4, kind: input, shape index: {}]   ;;  %s799_s5 = inlined_call_operand.vmem [shape: f32[32,8], index: 5, kind: input, shape index: {}]   ;;  %s800_s6 = inlined_call_operand.vmem [shape: f32[1,8], index: 6, kind: input, shape index: {}]   ;;  %s801_s7 = inlined_call_operand.vmem [shape: f32[128,8], index: 7, kind: output, shape index: {}]  }
   0x1   :  { %v43_v0 = vld [vmem:[%s794_s1 + $0x8] sm:$0xff]  ;;  %v42_v1 = vld [vmem:[%s794_s1] sm:$0xff]  ;;  %v28_v4 = vld [vmem:[%s795_s0 + $0x10] sm:$0xff] }
   0x2   :  { %111 = vmatpush.msra.mxu0 %v43_v0  ;;  %v26_v2 = vld [vmem:[%s795_s0] sm:$0xff]  ;;  %506 = vmatpush.msra.mxu3 %v43_v0  ;;  %v27_v3 = vld [vmem:[%s795_s0 + $0x8] sm:$0xff]  ;;  %v29_v5 = vld [vmem:[%s795_s0 + $0x18] sm:$0xff] }
   0x3   :  { %v30_v6 = vld [vmem:[%s795_s0 + $0x20] sm:$0xff]  ;;  %v31_v7 = vld [vmem:[%s795_s0 + $0x28] sm:$0xff]  ;;  %v32_v8 = vld [vmem:[%s795_s0 + $0x30] sm:$0xff] }
   0x4   :  { %112 = vmatpush.msra.mxu0 %v42_v1  ;;  %507 = vmatpush.msra.mxu3 %v42_v1  ;;  %v33_v9 = vld [vmem:[%s795_s0 + $0x38] sm:$0xff]  ;;  %v34_v10 = vld [vmem:[%s795_s0 + $0x40] sm:$0xff]  ;;  %v39_v11 = vld [vmem:[%s795_s0 + $0x68] sm:$0xff] }
   0x5   :  { %458 = vmatmul.msk.f32.vlgmr.msra.gmra.mxu0 %vm48_vm0, %v26_v2  ;;  %471 = vmatmul.msk.f32.vlgmr.msra.gmra.mxu3 %vm48_vm0, %v39_v11  ;;  %v181_v12 = vld [vmem:[%s797_s3 + $0x18] sm:$0xff]  ;;  %v35_v13 = vld [vmem:[%s795_s0 + $0x48] sm:$0xff]  ;;  %v40_v14 = vld [vmem:[%s795_s0 + $0x70] sm:$0xff] }
   0x6   :  { %247 = vmatpush.msra.mxu1 %v181_v12  ;;  %508 = vmatpush.msrb.mxu3 %v181_v12  ;;  %v36_v15 = vld [vmem:[%s795_s0 + $0x50] sm:$0xff]  ;;  %v41_v16 = vld [vmem:[%s795_s0 + $0x78] sm:$0xff]  ;;  %v38_v19 = vld [vmem:[%s795_s0 + $0x60] sm:$0xff] }
   0x7   :  { %v37_v17 = vld [vmem:[%s795_s0 + $0x58] sm:$0xff]  ;;  %v180_v18 = vld [vmem:[%s797_s3 + $0x10] sm:$0xff]  ;;  %v179_v20 = vld [vmem:[%s797_s3 + $0x8] sm:$0xff] }
   0x8   :  { %248 = vmatpush.msra.mxu1 %v180_v18  ;;  %509 = vmatpush.msrb.mxu3 %v180_v18  ;;  %v178_v21 = vld [vmem:[%s797_s3] sm:$0xff]  ;;  %v319_v59 = vld [vmem:[%s799_s5 + $0x18] sm:$0xff]  ;;  %v318_v63 = vld [vmem:[%s799_s5 + $0x10] sm:$0xff] }
   0x9   :  { %v644_v22 = vld [vmem:[%s796_s2] ss:$0 sm:$0xff]  ;;  %384 = vmatpush.msra.mxu2 %v319_v59  ;;  %v317_v1 = vld [vmem:[%s799_s5 + $0x8] sm:$0xff] }
   0xa   :  { %249 = vmatpush.msra.mxu1 %v179_v20  ;;  %510 = vmatpush.msrb.mxu3 %v179_v20  ;;  %v693_v11 = vld [vmem:[%s798_s4] ss:$0 sm:$0xff] }
   0xb   :  { %385 = vmatpush.msra.mxu2 %v318_v63 }
   0xc   :  { %250 = vmatpush.msra.mxu1 %v178_v21  ;;  %511 = vmatpush.msrb.mxu3 %v178_v21 }
   0xd   :  { %459 = vmatmul.msk.f32.gmra.mxu0 %vm48_vm0, %v27_v3  ;;  %472 = vmatmul.msk.f32.gmra.mxu3 %vm48_vm0, %v40_v14  ;;  %v316_v3 = vld [vmem:[%s799_s5] sm:$0xff] }
   0xe   :  { %512 = vmatpush.msra.mxu3 %v319_v59  ;;  %386 = vmatpush.msra.mxu2 %v317_v1 }
  0x10   :  { %513 = vmatpush.msra.mxu3 %v318_v63  ;;  %387 = vmatpush.msra.mxu2 %v316_v3 }
  0x12   :  { %514 = vmatpush.msra.mxu3 %v317_v1 }
  0x14   :  { %515 = vmatpush.msra.mxu3 %v316_v3 }
  0x15   :  { %460 = vmatmul.msk.f32.gmra.mxu0 %vm48_vm0, %v28_v4  ;;  %473 = vmatmul.msk.f32.gmra.mxu3 %vm48_vm0, %v41_v16 }
  0x1d   :  { %461 = vmatmul.msk.f32.gmra.mxu0 %vm48_vm0, %v29_v5 }
  0x25   :  { %462 = vmatmul.msk.f32.gmra.mxu0 %vm48_vm0, %v30_v6 }
  0x2d   :  { %463 = vmatmul.msk.f32.gmra.mxu0 %vm48_vm0, %v31_v7 }
  0x35   :  { %464 = vmatmul.msk.f32.gmra.mxu0 %vm48_vm0, %v32_v8 }
  0x3d   :  { %465 = vmatmul.msk.f32.gmra.mxu0 %vm48_vm0, %v33_v9 }
  0x45   :  { %466 = vmatmul.msk.f32.gmra.mxu0 %vm48_vm0, %v34_v10 }
  0x4d   :  { %467 = vmatmul.msk.f32.gmra.mxu0 %vm48_vm0, %v35_v13 }
  0x55   :  { %468 = vmatmul.msk.f32.gmra.mxu0 %vm48_vm0, %v36_v15 }
  0x5d   :  { %469 = vmatmul.msk.f32.gmra.mxu0 %vm48_vm0, %v37_v17 }
  0x65   :  { %470 = vmatmul.msk.f32.gmra.mxu0 %vm48_vm0, %v38_v19 }
  0x82   :  { %v114_v23 = vpop.f32.mrf.mxu0 }
  0x83   :  { %v115_v24 = vadd.f32 %v644_v22, %v114_v23 }
  0x85   :  { %v162_v25 = vmax.f32 %v115_v24, 0.0 }
  0x87   :  { %474 = vmatmul.msk.f32.vlgmr.msra.gmra.mxu1 %vm186_vm1, %v162_v25 }
  0x88   :  { %v153_v60 = vpop.f32.mrf.mxu3 }
  0x89   :  { %v154_v2 = vadd.f32 %v644_v22, %v153_v60  ;;  %v518_v60 = vld [vmem:[%s800_s6] ss:$0 sm:$0xff] }
  0x8a   :  { %v117_v26 = vpop.f32.mrf.mxu0 }
  0x8b   :  { %v118_v27 = vadd.f32 %v644_v22, %v117_v26  ;;  %v175_v5 = vmax.f32 %v154_v2, 0.0 }
  0x8d   :  { %v163_v28 = vmax.f32 %v118_v27, 0.0 }
  0x8f   :  { %475 = vmatmul.msk.f32.gmra.mxu1 %vm186_vm1, %v163_v28 }
  0x90   :  { %v156_v4 = vpop.f32.mrf.mxu3 }
  0x91   :  { %v157_v6 = vadd.f32 %v644_v22, %v156_v4 }
  0x92   :  { %v120_v29 = vpop.f32.mrf.mxu0 }
  0x93   :  { %v121_v30 = vadd.f32 %v644_v22, %v120_v29  ;;  %v176_v7 = vmax.f32 %v157_v6, 0.0 }
  0x95   :  { %v164_v31 = vmax.f32 %v121_v30, 0.0 }
  0x97   :  { %476 = vmatmul.msk.f32.gmra.mxu1 %vm186_vm1, %v164_v31 }
  0x98   :  { %v159_v8 = vpop.f32.mrf.mxu3 }
  0x99   :  { %v160_v9 = vadd.f32 %v644_v22, %v159_v8 }
  0x9a   :  { %v123_v32 = vpop.f32.mrf.mxu0 }
  0x9b   :  { %v124_v33 = vadd.f32 %v644_v22, %v123_v32  ;;  %v177_v10 = vmax.f32 %v160_v9, 0.0 }
  0x9d   :  { %v165_v34 = vmax.f32 %v124_v33, 0.0 }
  0x9f   :  { %477 = vmatmul.msk.f32.gmra.mxu1 %vm186_vm1, %v165_v34 }
  0xa2   :  { %v126_v35 = vpop.f32.mrf.mxu0 }
  0xa3   :  { %v127_v36 = vadd.f32 %v644_v22, %v126_v35 }
  0xa5   :  { %v166_v37 = vmax.f32 %v127_v36, 0.0 }
  0xa7   :  { %478 = vmatmul.msk.f32.gmra.mxu1 %vm186_vm1, %v166_v37 }
  0xaa   :  { %v129_v38 = vpop.f32.mrf.mxu0 }
  0xab   :  { %v130_v39 = vadd.f32 %v644_v22, %v129_v38 }
  0xad   :  { %v167_v40 = vmax.f32 %v130_v39, 0.0 }
  0xaf   :  { %479 = vmatmul.msk.f32.gmra.mxu1 %vm186_vm1, %v167_v40 }
  0xb2   :  { %v132_v41 = vpop.f32.mrf.mxu0 }
  0xb3   :  { %v133_v42 = vadd.f32 %v644_v22, %v132_v41 }
  0xb5   :  { %v168_v43 = vmax.f32 %v133_v42, 0.0 }
  0xb7   :  { %480 = vmatmul.msk.f32.gmra.mxu1 %vm186_vm1, %v168_v43 }
  0xba   :  { %v135_v44 = vpop.f32.mrf.mxu0 }
  0xbb   :  { %v136_v45 = vadd.f32 %v644_v22, %v135_v44 }
  0xbd   :  { %v169_v46 = vmax.f32 %v136_v45, 0.0 }
  0xbf   :  { %481 = vmatmul.msk.f32.gmra.mxu1 %vm186_vm1, %v169_v46 }
  0xc2   :  { %v138_v47 = vpop.f32.mrf.mxu0 }
  0xc3   :  { %v139_v48 = vadd.f32 %v644_v22, %v138_v47 }
  0xc5   :  { %v170_v49 = vmax.f32 %v139_v48, 0.0 }
  0xc7   :  { %482 = vmatmul.msk.f32.gmra.mxu1 %vm186_vm1, %v170_v49 }
  0xca   :  { %v141_v50 = vpop.f32.mrf.mxu0 }
  0xcb   :  { %v142_v51 = vadd.f32 %v644_v22, %v141_v50 }
  0xcd   :  { %v171_v52 = vmax.f32 %v142_v51, 0.0 }
  0xcf   :  { %483 = vmatmul.msk.f32.gmra.mxu1 %vm186_vm1, %v171_v52 }
  0xd2   :  { %v144_v53 = vpop.f32.mrf.mxu0 }
  0xd3   :  { %v145_v54 = vadd.f32 %v644_v22, %v144_v53 }
  0xd5   :  { %v172_v55 = vmax.f32 %v145_v54, 0.0 }
  0xd7   :  { %484 = vmatmul.msk.f32.gmra.mxu1 %vm186_vm1, %v172_v55 }
  0xda   :  { %v147_v56 = vpop.f32.mrf.mxu0 }
  0xdb   :  { %v148_v57 = vadd.f32 %v644_v22, %v147_v56 }
  0xdd   :  { %v173_v58 = vmax.f32 %v148_v57, 0.0 }
  0xdf   :  { %485 = vmatmul.msk.f32.gmra.mxu1 %vm186_vm1, %v173_v58 }
  0xe2   :  { %v150_v61 = vpop.f32.mrf.mxu0 }
  0xe3   :  { %v151_v62 = vadd.f32 %v644_v22, %v150_v61 }
  0xe5   :  { %v174_v0 = vmax.f32 %v151_v62, 0.0 }
  0xe7   :  { %486 = vmatmul.msk.f32.vlgmr.msrb.gmra.mxu3 %vm186_vm1, %v174_v0 }
  0xef   :  { %487 = vmatmul.msk.f32.gmra.mxu3 %vm186_vm1, %v175_v5 }
  0xf7   :  { %488 = vmatmul.msk.f32.gmra.mxu3 %vm186_vm1, %v176_v7 }
  0xff   :  { %489 = vmatmul.msk.f32.gmra.mxu3 %vm186_vm1, %v177_v10 }
 0x104   :  { %v252_v12 = vpop.f32.mrf.mxu1 }
 0x105   :  { %v253_v13 = vadd.f32 %v693_v11, %v252_v12 }
 0x107   :  { %v300_v14 = vmax.f32 %v253_v13, 0.0 }
 0x109   :  { %490 = vmatmul.msk.f32.vlgmr.msra.gmra.mxu2 %vm186_vm1, %v300_v14 }
 0x10c   :  { %v255_v15 = vpop.f32.mrf.mxu1 }
 0x10d   :  { %v256_v16 = vadd.f32 %v693_v11, %v255_v15 }
 0x10f   :  { %v301_v17 = vmax.f32 %v256_v16, 0.0 }
 0x111   :  { %491 = vmatmul.msk.f32.gmra.mxu2 %vm186_vm1, %v301_v17 }
 0x114   :  { %v258_v18 = vpop.f32.mrf.mxu1 }
 0x115   :  { %v259_v19 = vadd.f32 %v693_v11, %v258_v18 }
 0x117   :  { %v302_v20 = vmax.f32 %v259_v19, 0.0 }
 0x119   :  { %492 = vmatmul.msk.f32.gmra.mxu2 %vm186_vm1, %v302_v20 }
 0x11c   :  { %v261_v21 = vpop.f32.mrf.mxu1 }
 0x11d   :  { %v262_v22 = vadd.f32 %v693_v11, %v261_v21 }
 0x11f   :  { %v303_v23 = vmax.f32 %v262_v22, 0.0 }
 0x121   :  { %493 = vmatmul.msk.f32.gmra.mxu2 %vm186_vm1, %v303_v23 }
 0x124   :  { %v264_v24 = vpop.f32.mrf.mxu1 }
 0x125   :  { %v265_v25 = vadd.f32 %v693_v11, %v264_v24 }
 0x127   :  { %v304_v26 = vmax.f32 %v265_v25, 0.0 }
 0x129   :  { %494 = vmatmul.msk.f32.gmra.mxu2 %vm186_vm1, %v304_v26 }
 0x12c   :  { %v267_v27 = vpop.f32.mrf.mxu1 }
 0x12d   :  { %v268_v28 = vadd.f32 %v693_v11, %v267_v27 }
 0x12f   :  { %v305_v29 = vmax.f32 %v268_v28, 0.0 }
 0x131   :  { %495 = vmatmul.msk.f32.gmra.mxu2 %vm186_vm1, %v305_v29 }
 0x134   :  { %v270_v30 = vpop.f32.mrf.mxu1 }
 0x135   :  { %v271_v31 = vadd.f32 %v693_v11, %v270_v30 }
 0x137   :  { %v306_v32 = vmax.f32 %v271_v31, 0.0 }
 0x139   :  { %496 = vmatmul.msk.f32.gmra.mxu2 %vm186_vm1, %v306_v32 }
 0x13c   :  { %v273_v33 = vpop.f32.mrf.mxu1 }
 0x13d   :  { %v274_v34 = vadd.f32 %v693_v11, %v273_v33 }
 0x13f   :  { %v307_v35 = vmax.f32 %v274_v34, 0.0 }
 0x141   :  { %497 = vmatmul.msk.f32.gmra.mxu2 %vm186_vm1, %v307_v35 }
 0x144   :  { %v276_v36 = vpop.f32.mrf.mxu1 }
 0x145   :  { %v277_v37 = vadd.f32 %v693_v11, %v276_v36 }
 0x147   :  { %v308_v38 = vmax.f32 %v277_v37, 0.0 }
 0x149   :  { %498 = vmatmul.msk.f32.gmra.mxu2 %vm186_vm1, %v308_v38 }
 0x14c   :  { %v279_v39 = vpop.f32.mrf.mxu1 }
 0x14d   :  { %v280_v40 = vadd.f32 %v693_v11, %v279_v39 }
 0x14f   :  { %v309_v41 = vmax.f32 %v280_v40, 0.0 }
 0x151   :  { %499 = vmatmul.msk.f32.gmra.mxu2 %vm186_vm1, %v309_v41 }
 0x154   :  { %v282_v42 = vpop.f32.mrf.mxu1 }
 0x155   :  { %v283_v43 = vadd.f32 %v693_v11, %v282_v42 }
 0x157   :  { %v310_v44 = vmax.f32 %v283_v43, 0.0 }
 0x159   :  { %500 = vmatmul.msk.f32.gmra.mxu2 %vm186_vm1, %v310_v44 }
 0x15c   :  { %v285_v45 = vpop.f32.mrf.mxu1 }
 0x15d   :  { %v286_v46 = vadd.f32 %v693_v11, %v285_v45 }
 0x15f   :  { %v311_v47 = vmax.f32 %v286_v46, 0.0 }
 0x161   :  { %501 = vmatmul.msk.f32.gmra.mxu2 %vm186_vm1, %v311_v47 }
 0x16a   :  { %v288_v48 = vpop.f32.mrf.mxu3 }
 0x16b   :  { %v289_v49 = vadd.f32 %v693_v11, %v288_v48 }
 0x16d   :  { %v312_v50 = vmax.f32 %v289_v49, 0.0 }
 0x16f   :  { %502 = vmatmul.msk.f32.vlgmr.msra.gmra.mxu3 %vm186_vm1, %v312_v50 }
 0x172   :  { %v291_v51 = vpop.f32.mrf.mxu3 }
 0x173   :  { %v292_v52 = vadd.f32 %v693_v11, %v291_v51 }
 0x175   :  { %v313_v53 = vmax.f32 %v292_v52, 0.0 }
 0x177   :  { %503 = vmatmul.msk.f32.gmra.mxu3 %vm186_vm1, %v313_v53 }
 0x17a   :  { %v294_v54 = vpop.f32.mrf.mxu3 }
 0x17b   :  { %v295_v55 = vadd.f32 %v693_v11, %v294_v54 }
 0x17d   :  { %v314_v56 = vmax.f32 %v295_v55, 0.0 }
 0x17f   :  { %504 = vmatmul.msk.f32.gmra.mxu3 %vm186_vm1, %v314_v56 }
 0x182   :  { %v297_v57 = vpop.f32.mrf.mxu3 }
 0x183   :  { %v298_v58 = vadd.f32 %v693_v11, %v297_v57 }
 0x185   :  { %v315_v59 = vmax.f32 %v298_v58, 0.0 }
 0x187   :  { %505 = vmatmul.msk.f32.gmra.mxu3 %vm186_vm1, %v315_v59 }
 0x18c   :  { %v389_v61 = vpop.f32.mrf.mxu2 }
 0x18d   :  { %v390_v62 = vadd.f32 %v518_v60, %v389_v61 }
 0x18f   :  { %438 = vst.msk [vmem:[%s801_s7] sm:$0xff] %vm437_vm2, %v390_v62 }
 0x194   :  { %v392_v63 = vpop.f32.mrf.mxu2 }
 0x195   :  { %v393_v0 = vadd.f32 %v518_v60, %v392_v63 }
 0x197   :  { %439 = vst.msk [vmem:[%s801_s7 + $0x8] sm:$0xff] %vm437_vm2, %v393_v0 }
 0x19c   :  { %v395_v1 = vpop.f32.mrf.mxu2 }
 0x19d   :  { %v396_v2 = vadd.f32 %v518_v60, %v395_v1 }
 0x19f   :  { %440 = vst.msk [vmem:[%s801_s7 + $0x10] sm:$0xff] %vm437_vm2, %v396_v2 }
 0x1a4   :  { %v398_v3 = vpop.f32.mrf.mxu2 }
 0x1a5   :  { %v399_v4 = vadd.f32 %v518_v60, %v398_v3 }
 0x1a7   :  { %441 = vst.msk [vmem:[%s801_s7 + $0x18] sm:$0xff] %vm437_vm2, %v399_v4 }
 0x1ac   :  { %v401_v5 = vpop.f32.mrf.mxu2 }
 0x1ad   :  { %v402_v6 = vadd.f32 %v518_v60, %v401_v5 }
 0x1af   :  { %442 = vst.msk [vmem:[%s801_s7 + $0x20] sm:$0xff] %vm437_vm2, %v402_v6 }
 0x1b4   :  { %v404_v7 = vpop.f32.mrf.mxu2 }
 0x1b5   :  { %v405_v8 = vadd.f32 %v518_v60, %v404_v7 }
 0x1b7   :  { %443 = vst.msk [vmem:[%s801_s7 + $0x28] sm:$0xff] %vm437_vm2, %v405_v8 }
 0x1bc   :  { %v407_v9 = vpop.f32.mrf.mxu2 }
 0x1bd   :  { %v408_v10 = vadd.f32 %v518_v60, %v407_v9 }
 0x1bf   :  { %444 = vst.msk [vmem:[%s801_s7 + $0x30] sm:$0xff] %vm437_vm2, %v408_v10 }
 0x1c4   :  { %v410_v11 = vpop.f32.mrf.mxu2 }
 0x1c5   :  { %v411_v12 = vadd.f32 %v518_v60, %v410_v11 }
 0x1c7   :  { %445 = vst.msk [vmem:[%s801_s7 + $0x38] sm:$0xff] %vm437_vm2, %v411_v12 }
 0x1cc   :  { %v413_v13 = vpop.f32.mrf.mxu2 }
 0x1cd   :  { %v414_v14 = vadd.f32 %v518_v60, %v413_v13 }
 0x1cf   :  { %446 = vst.msk [vmem:[%s801_s7 + $0x40] sm:$0xff] %vm437_vm2, %v414_v14 }
 0x1d4   :  { %v416_v15 = vpop.f32.mrf.mxu2 }
 0x1d5   :  { %v417_v16 = vadd.f32 %v518_v60, %v416_v15 }
 0x1d7   :  { %447 = vst.msk [vmem:[%s801_s7 + $0x48] sm:$0xff] %vm437_vm2, %v417_v16 }
 0x1dc   :  { %v419_v17 = vpop.f32.mrf.mxu2 }
 0x1dd   :  { %v420_v18 = vadd.f32 %v518_v60, %v419_v17 }
 0x1df   :  { %448 = vst.msk [vmem:[%s801_s7 + $0x50] sm:$0xff] %vm437_vm2, %v420_v18 }
 0x1e4   :  { %v422_v19 = vpop.f32.mrf.mxu2 }
 0x1e5   :  { %v423_v20 = vadd.f32 %v518_v60, %v422_v19 }
 0x1e7   :  { %449 = vst.msk [vmem:[%s801_s7 + $0x58] sm:$0xff] %vm437_vm2, %v423_v20 }
 0x1f2   :  { %v425_v21 = vpop.f32.mrf.mxu3 }
 0x1f3   :  { %v426_v22 = vadd.f32 %v518_v60, %v425_v21 }
 0x1f5   :  { %450 = vst.msk [vmem:[%s801_s7 + $0x60] sm:$0xff] %vm437_vm2, %v426_v22 }
 0x1fa   :  { %v428_v23 = vpop.f32.mrf.mxu3 }
 0x1fb   :  { %v429_v24 = vadd.f32 %v518_v60, %v428_v23 }
 0x1fd   :  { %451 = vst.msk [vmem:[%s801_s7 + $0x68] sm:$0xff] %vm437_vm2, %v429_v24 }
 0x202   :  { %v431_v25 = vpop.f32.mrf.mxu3 }
 0x203   :  { %v432_v26 = vadd.f32 %v518_v60, %v431_v25 }
 0x205   :  { %452 = vst.msk [vmem:[%s801_s7 + $0x70] sm:$0xff] %vm437_vm2, %v432_v26 }
 0x20a   :  { %v434_v27 = vpop.f32.mrf.mxu3 }
 0x20b   :  { %v435_v28 = vadd.f32 %v518_v60, %v434_v27 }
 0x20d   :  { %453 = vst.msk [vmem:[%s801_s7 + $0x78] sm:$0xff] %vm437_vm2, %v435_v28 }

</bundles_post_ra>
